<compile_context>
chip_gen: v5e
topology: v5e:2x2
jax: 0.10.0
libtpu: 0.0.40
codegen_flags: <defaults>
</compile_context>

<pallas_src>
import jax
import jax.numpy as jnp
from jax import lax
from jax.experimental import pallas as pl
from jax.experimental.pallas import tpu as pltpu

LN_EPS = 1e-5  # PyTorch nn.LayerNorm default


# ---------------------------------------------------------------------------
# Kernels
# ---------------------------------------------------------------------------
def _routing_head_kernel_dout1(x_ref, wc_ref, wp_ref, bias_ref, o_ref):
    """d_out == 1 path.  Wc = W * Wf[:, 0] is folded outside the kernel.

    v[b, n]   = rsqrt(var[b, n]) * sum_d (x[b, n, d] - mean[b, n]) * Wc[depth(n), d]
    out[b, o] = sum_n v[b, n] * Wp[o, n] + bias[o]
    """
    tb, n_pos, d_depth, _ = x_ref.shape

    # ---- LayerNorm stats (two-pass, f32) over the lane axis d_inp ----
    x = x_ref[...].astype(jnp.float32)                      # (tb, n_pos, d_depth, d)
    mean = jnp.mean(x, axis=-1, keepdims=True)
    xc = x - mean
    var = jnp.mean(xc * xc, axis=-1)                        # (tb, n_pos, d_depth)
    rstd = lax.rsqrt(var + LN_EPS)

    # ---- fused scale + d_inp contraction on VPU/XLU (no 1-row MXU push) ----
    wc = wc_ref[...].astype(jnp.float32)                    # (d_depth, d), bcast over n_pos
    s = jnp.sum(xc * wc[None, None], axis=-1)               # (tb, n_pos, d_depth)
    v = (s * rstd).reshape(tb, n_pos * d_depth)             # (tb, N)

    # ---- N contraction on the MXU, batch-fused ----
    out = lax.dot_general(v, wp_ref[...], (((1,), (1,)), ((), ())),
                          preferred_element_type=jnp.float32)    # (tb, n_out)
    o_ref[0] = (out + bias_ref[...]).astype(o_ref.dtype)


def _routing_head_kernel_general(x_ref, w_ref, wft_ref, wp_ref, bias_ref, o_ref):
    """General d_out path: two fused 2-D MXU matmuls (d_inp first, then N)."""
    tb, n_pos, d_depth, d = x_ref.shape
    n = n_pos * d_depth
    d_out = wft_ref.shape[0]
    n_out = wp_ref.shape[0]

    x = x_ref[...].astype(jnp.float32)                      # (tb, n_pos, d_depth, d)
    mean = jnp.mean(x, axis=-1, keepdims=True)
    xc = x - mean
    var = jnp.mean(xc * xc, axis=-1, keepdims=True)
    rstd = lax.rsqrt(var + LN_EPS)

    w = w_ref[...].astype(jnp.float32)                      # (d_depth, d), bcast over n_pos
    y = (xc * rstd) * w[None, None]                         # fused normalize + scale
    y2 = y.reshape(tb * n, d)                               # (TB*N, d)

    # Contract d_inp first (d_out << n_out); lane-dense MXU result.
    v_t = lax.dot_general(wft_ref[...], y2, (((1,), (1,)), ((), ())),
                          preferred_element_type=jnp.float32)    # (d_out, TB*N)
    v = v_t.reshape(d_out * tb, n)                           # rows = (e, b); no per-e slicing

    out = lax.dot_general(v, wp_ref[...], (((1,), (1,)), ((), ())),
                          preferred_element_type=jnp.float32)    # (d_out*TB, n_out)
    out = out.reshape(d_out, tb, n_out)                      # lane-dense in n_out
    o_ref[0] = (out + bias_ref[...][:, None, :]).astype(o_ref.dtype)


# ---------------------------------------------------------------------------
# Wrapper
# ---------------------------------------------------------------------------
def _pick_block_b(batch, n_tokens, d_inp, itemsize, block_b):
    """Bytes-budgeted batch block; >= 2 balanced grid steps only on multi-TC parts."""
    if block_b is None:
        target_bytes = 4 << 20                               # ~4 MiB of x per grid step
        per_sample = max(1, n_tokens * d_inp * itemsize)
        block_b = max(1, min(batch, target_bytes // per_sample))
        kind = ""
        try:
            kind = jax.devices()[0].device_kind.lower()
        except Exception:
            pass
        # v4/v5p (megacore) and v7x (2 TensorCores) want >= 2 parallel grid steps;
        # single-TC v5e/v6e run the grid serially, so no such constraint there.
        if any(tag in kind for tag in ("v4", "v5p", "v7", "7x")) and batch > 1:
            block_b = min(block_b, pl.cdiv(batch, 2))
    block_b = max(1, min(int(block_b), batch))
    n_blocks = pl.cdiv(batch, block_b)
    return block_b, n_blocks


def routing_head(x, W, B, Wp, Wf, *, block_b=None):
    """x: [Bsz, n_pos, d_depth, d_inp] -> [Bsz, n_out] (d_out==1) or [Bsz, n_out, d_out]."""
    out_dtype = x.dtype
    Bsz, n_pos, d_depth, d_inp = x.shape
    N = n_pos * d_depth
    n_out = Wp.shape[0]
    d_out = Wf.shape[1]

    itemsize = jnp.dtype(x.dtype).itemsize
    block_b, n_blocks = _pick_block_b(Bsz, N, d_inp, itemsize, block_b)
    Bsz_pad = block_b * n_blocks
    if Bsz_pad != Bsz:
        # Pad the batch rather than shrinking block_b (keeps fused tiles on the roofline).
        x = jnp.pad(x, ((0, Bsz_pad - Bsz), (0, 0), (0, 0), (0, 0)))

    # Fold B through the (assumed linear) route into a constant output bias.
    B_flat = jnp.tile(B.astype(jnp.float32), (n_pos, 1))                          # (N, d_inp)
    out_bias = (Wp.astype(jnp.float32) @ B_flat) @ Wf.astype(jnp.float32)         # (n_out, d_out)

    wp = Wp.astype(jnp.float32)

    # Per-step VMEM estimate: double-buffered x tile + ~4x f32 intermediates.
    x_tile_in = block_b * N * d_inp * itemsize
    x_tile_f32 = block_b * N * d_inp * 4
    est = 2 * x_tile_in + 4 * x_tile_f32
    vmem_limit = None
    if est > (12 << 20):             # only override the scoped default when actually needed
        vmem_limit = int(min(max(est * 5 // 4, 16 << 20), 48 << 20))
    cparams = pltpu.CompilerParams(dimension_semantics=("parallel",),
                                   vmem_limit_bytes=vmem_limit)
    # TODO(synk): there is no in-kernel tiling over N / d_inp; a single sample whose
    #             (N, d_inp) f32 slab (plus ~4x intermediates) exceeds scoped VMEM
    #             would need an extra reduction grid axis over N.

    x_spec = pl.BlockSpec((block_b, n_pos, d_depth, d_inp), lambda b: (b, 0, 0, 0))

    if d_out == 1:
        # Fold Wf into W as well: Wc = W * Wf[:, 0] -> skip the 1-row MXU matmul entirely.
        wc = W.astype(jnp.float32) * Wf[:, 0].astype(jnp.float32)[None, :]        # (d_depth, d_inp)
        bias = out_bias.T                                                         # (1, n_out)
        out = pl.pallas_call(
            _routing_head_kernel_dout1,
            out_shape=jax.ShapeDtypeStruct((n_blocks, block_b, n_out), out_dtype),
            grid_spec=pltpu.PrefetchScalarGridSpec(
                num_scalar_prefetch=0,
                grid=(n_blocks,),
                in_specs=[
                    x_spec,
                    pl.BlockSpec((d_depth, d_inp), lambda b: (0, 0)),
                    pl.BlockSpec((n_out, N), lambda b: (0, 0)),
                    pl.BlockSpec((1, n_out), lambda b: (0, 0)),
                ],
                out_specs=pl.BlockSpec((1, block_b, n_out), lambda b: (b, 0, 0)),
            ),
            compiler_params=cparams,
        )(x, wc, wp, bias)
        return out.reshape(Bsz_pad, n_out)[:Bsz]

    wft = Wf.T.astype(jnp.float32)                                                # (d_out, d_inp)
    bias_t = out_bias.T                                                           # (d_out, n_out)
    out = pl.pallas_call(
        _routing_head_kernel_general,
        out_shape=jax.ShapeDtypeStruct((n_blocks, d_out, block_b, n_out), out_dtype),
        grid_spec=pltpu.PrefetchScalarGridSpec(
            num_scalar_prefetch=0,
            grid=(n_blocks,),
            in_specs=[
                x_spec,
                pl.BlockSpec((d_depth, d_inp), lambda b: (0, 0)),
                pl.BlockSpec((d_out, d_inp), lambda b: (0, 0)),
                pl.BlockSpec((n_out, N), lambda b: (0, 0)),
                pl.BlockSpec((d_out, n_out), lambda b: (0, 0)),
            ],
            out_specs=pl.BlockSpec((1, d_out, block_b, n_out), lambda b: (b, 0, 0, 0)),
        ),
        compiler_params=cparams,
    )(x, W.astype(jnp.float32), wft, wp, bias_t)
    # (n_blocks, d_out, block_b, n_out) -> (Bsz, n_out, d_out).  In-kernel stores are
    # lane-dense in n_out; the tiny final transpose runs outside the kernel.
    out = jnp.transpose(out, (0, 2, 3, 1)).reshape(Bsz_pad, n_out, d_out)
    return out[:Bsz]


# ---------------------------------------------------------------------------
# Pure-JAX reference (mirrors the PyTorch forward)
# ---------------------------------------------------------------------------
def routing_head_ref(x, W, B, Wp, Wf):
    xf = x.astype(jnp.float32)
    mean = jnp.mean(xf, axis=-1, keepdims=True)
    var = jnp.mean((xf - mean) ** 2, axis=-1, keepdims=True)
    y = (xf - mean) / jnp.sqrt(var + LN_EPS)
    y = y * W + B
    y = y.reshape(x.shape[0], -1, x.shape[-1])
    z = jnp.einsum("on,bnd->bod", Wp, y)
    z = jnp.einsum("bod,de->boe", z, Wf)
    return z[..., 0] if Wf.shape[1] == 1 else z


# ---------------------------------------------------------------------------
# Demo / self-check
# ---------------------------------------------------------------------------
if __name__ == "__main__":
    key = jax.random.PRNGKey(0)
    k = jax.random.split(key, 8)

    # ---- case 1: d_out == 1 (module returns [Bsz, n_out]) ----
    Bsz, n_pos, d_depth, d_inp, n_out, d_out = 2, 8, 4, 32, 8, 1
    N = n_pos * d_depth

    # Non-zero mean exercises the two-pass LayerNorm; random W/B exercise the folding.
    x = jax.random.normal(k[0], (Bsz, n_pos, d_depth, d_inp), jnp.float32) + 1.5
    W = 1.0 + 0.1 * jax.random.normal(k[1], (d_depth, d_inp), jnp.float32)
    Bp = 0.1 * jax.random.normal(k[2], (d_depth, d_inp), jnp.float32)
    Wp = jax.random.normal(k[3], (n_out, N), jnp.float32) / jnp.sqrt(N)
    Wf = jax.random.normal(k[4], (d_inp, d_out), jnp.float32) / jnp.sqrt(d_inp)

    out = jax.block_until_ready(routing_head(x, W, Bp, Wp, Wf))
    ref = routing_head_ref(x, W, Bp, Wp, Wf)
    assert out.shape == (Bsz, n_out), out.shape
    assert jnp.allclose(out, ref, atol=1e-2, rtol=1e-2), (out, ref)

    # ---- case 2: d_out > 1, odd batch (exercises padding + multi-block grid) ----
    Bsz2, d_out2, n_out2 = 3, 3, 8
    x2 = jax.random.normal(k[5], (Bsz2, n_pos, d_depth, d_inp), jnp.float32) - 0.5
    Wp2 = jax.random.normal(k[6], (n_out2, N), jnp.float32) / jnp.sqrt(N)
    Wf2 = jax.random.normal(k[7], (d_inp, d_out2), jnp.float32) / jnp.sqrt(d_inp)

    out2 = jax.block_until_ready(routing_head(x2, W, Bp, Wp2, Wf2, block_b=2))
    ref2 = routing_head_ref(x2, W, Bp, Wp2, Wf2)
    assert out2.shape == (Bsz2, n_out2, d_out2), out2.shape
    assert jnp.allclose(out2, ref2, atol=1e-2, rtol=1e-2), (out2, ref2)

    print("KERNEL_OK")
</pallas_src>

<mosaic_0001>
module attributes {stable_mosaic.version = 11 : i64} {
  func.func @_routing_head_kernel_dout1(%arg0: i32, %arg1: memref<2x8x4x32xf32, #tpu.memory_space<vmem>>, %arg2: memref<4x32xf32, #tpu.memory_space<vmem>>, %arg3: memref<8x32xf32, #tpu.memory_space<vmem>>, %arg4: memref<1x8xf32, #tpu.memory_space<vmem>>, %arg5: memref<1x2x8xf32, #tpu.memory_space<vmem>>) attributes {dimension_semantics = [#tpu.dimension_semantics<parallel>], iteration_bounds = array<i64: 1>, scalar_prefetch = 0 : i64, scratch_operands = 0 : i64, tpu.core_type = #tpu.core_type<tc>, window_params = [{transform_indices = @transform_0, window_bounds = array<i64: 2, 8, 4, 32>}, {pipeline_mode = #tpu.pipeline_mode<synchronous>, transform_indices = @transform_1, window_bounds = array<i64: 4, 32>}, {pipeline_mode = #tpu.pipeline_mode<synchronous>, transform_indices = @transform_2, window_bounds = array<i64: 8, 32>}, {pipeline_mode = #tpu.pipeline_mode<synchronous>, transform_indices = @transform_3, window_bounds = array<i64: 1, 8>}, {transform_indices = @transform_4, window_bounds = array<i64: 1, 2, 8>}]} {
    %c0 = arith.constant 0 : index
    %c0_0 = arith.constant 0 : index
    %c0_1 = arith.constant 0 : index
    %c0_2 = arith.constant 0 : index
    %0 = vector.load %arg1[%c0, %c0_0, %c0_1, %c0_2] : memref<2x8x4x32xf32, #tpu.memory_space<vmem>>, vector<2x8x4x32xf32>
    %cst = arith.constant dense<0.000000e+00> : vector<2x8x4xf32>
    %1 = vector.multi_reduction <add>, %0, %cst [3] : vector<2x8x4x32xf32> to vector<2x8x4xf32>
    %2 = vector.shape_cast %1 : vector<2x8x4xf32> to vector<2x8x4x1xf32>
    %cst_3 = arith.constant 3.200000e+01 : f32
    %3 = vector.broadcast %cst_3 : f32 to vector<2x8x4x1xf32>
    %4 = arith.divf %2, %3 : vector<2x8x4x1xf32>
    %5 = vector.broadcast %4 : vector<2x8x4x1xf32> to vector<2x8x4x32xf32>
    %6 = arith.subf %0, %5 : vector<2x8x4x32xf32>
    %7 = arith.mulf %6, %6 : vector<2x8x4x32xf32>
    %cst_4 = arith.constant dense<0.000000e+00> : vector<2x8x4xf32>
    %8 = vector.multi_reduction <add>, %7, %cst_4 [3] : vector<2x8x4x32xf32> to vector<2x8x4xf32>
    %cst_5 = arith.constant 3.200000e+01 : f32
    %9 = vector.broadcast %cst_5 : f32 to vector<2x8x4xf32>
    %10 = arith.divf %8, %9 : vector<2x8x4xf32>
    %cst_6 = arith.constant 9.99999974E-6 : f32
    %11 = vector.broadcast %cst_6 : f32 to vector<2x8x4xf32>
    %12 = arith.addf %10, %11 : vector<2x8x4xf32>
    %13 = math.rsqrt %12 : vector<2x8x4xf32>
    %c0_7 = arith.constant 0 : index
    %c0_8 = arith.constant 0 : index
    %14 = vector.load %arg2[%c0_7, %c0_8] : memref<4x32xf32, #tpu.memory_space<vmem>>, vector<4x32xf32>
    %15 = vector.shape_cast %14 : vector<4x32xf32> to vector<1x1x4x32xf32>
    %16 = vector.broadcast %15 : vector<1x1x4x32xf32> to vector<2x8x4x32xf32>
    %17 = arith.mulf %6, %16 : vector<2x8x4x32xf32>
    %cst_9 = arith.constant dense<0.000000e+00> : vector<2x8x4xf32>
    %18 = vector.multi_reduction <add>, %17, %cst_9 [3] : vector<2x8x4x32xf32> to vector<2x8x4xf32>
    %19 = arith.mulf %18, %13 : vector<2x8x4xf32>
    %20 = vector.shape_cast %19 : vector<2x8x4xf32> to vector<2x32xf32>
    %c0_10 = arith.constant 0 : index
    %c0_11 = arith.constant 0 : index
    %21 = vector.load %arg3[%c0_10, %c0_11] : memref<8x32xf32, #tpu.memory_space<vmem>>, vector<8x32xf32>
    %cst_12 = arith.constant dense<0.000000e+00> : vector<2x8xf32>
    %22 = tpu.matmul %20, %21, %cst_12 {dimension_numbers = #tpu.dot_dimension_numbers<[1], [1], [0], [0], [0, 0, 1, 0], [], []>} : vector<2x32xf32>, vector<8x32xf32>, vector<2x8xf32> -> vector<2x8xf32>
    %c0_13 = arith.constant 0 : index
    %c0_14 = arith.constant 0 : index
    %23 = vector.load %arg4[%c0_13, %c0_14] : memref<1x8xf32, #tpu.memory_space<vmem>>, vector<1x8xf32>
    %24 = vector.broadcast %23 : vector<1x8xf32> to vector<2x8xf32>
    %25 = arith.addf %22, %24 : vector<2x8xf32>
    %c0_15 = arith.constant 0 : index
    %c0_16 = arith.constant 0 : index
    %c0_17 = arith.constant 0 : index
    %26 = vector.load %arg5[%c0_15, %c0_16, %c0_17] : memref<1x2x8xf32, #tpu.memory_space<vmem>>, vector<1x2x8xf32>
    %27 = vector.shape_cast %26 : vector<1x2x8xf32> to vector<2x8xf32>
    %28 = vector.shape_cast %25 : vector<2x8xf32> to vector<1x2x8xf32>
    tpu.vector_store %arg5[%c0_15, %c0_16, %c0_17], %28 {strides = array<i32>} : memref<1x2x8xf32, #tpu.memory_space<vmem>>, vector<1x2x8xf32>,
    return
  }
  func.func @transform_0(%arg0: i32) -> (i32, i32, i32, i32) {
    %c0_i32 = arith.constant 0 : i32
    %c0_i32_0 = arith.constant 0 : i32
    %c0_i32_1 = arith.constant 0 : i32
    %c0_i32_2 = arith.constant 0 : i32
    return %arg0, %c0_i32, %c0_i32_0, %c0_i32_1 : i32, i32, i32, i32
  }
  func.func @transform_1(%arg0: i32) -> (i32, i32) {
    %c0_i32 = arith.constant 0 : i32
    %c0_i32_0 = arith.constant 0 : i32
    %c0_i32_1 = arith.constant 0 : i32
    return %c0_i32, %c0_i32_0 : i32, i32
  }
  func.func @transform_2(%arg0: i32) -> (i32, i32) {
    %c0_i32 = arith.constant 0 : i32
    %c0_i32_0 = arith.constant 0 : i32
    %c0_i32_1 = arith.constant 0 : i32
    return %c0_i32, %c0_i32_0 : i32, i32
  }
  func.func @transform_3(%arg0: i32) -> (i32, i32) {
    %c0_i32 = arith.constant 0 : i32
    %c0_i32_0 = arith.constant 0 : i32
    %c0_i32_1 = arith.constant 0 : i32
    return %c0_i32, %c0_i32_0 : i32, i32
  }
  func.func @transform_4(%arg0: i32) -> (i32, i32, i32) {
    %c0_i32 = arith.constant 0 : i32
    %c0_i32_0 = arith.constant 0 : i32
    %c0_i32_1 = arith.constant 0 : i32
    return %arg0, %c0_i32, %c0_i32_0 : i32, i32, i32
  }
}

</mosaic_0001>

<bundles_post_ra>
// kernel: tpu_custom_call.1
= control target key start
LH: loop header
LB: loop body
LE: loop exit
PB: predicated region body
PF: predicated region fallthrough
CT: control target
= control target key end

     0   :  { %9 = vsyncpa [#allocation3], 0  ;;  %s1510_s0 = inlined_call_operand.hbm [shape: f32[2,8,4,32], index: 0, kind: input, shape index: {}]   ;;  %s1511_s1 = inlined_call_operand.hbm [shape: f32[4,32], index: 1, kind: input, shape index: {}]   ;;  %s1512_s2 = inlined_call_operand.hbm [shape: f32[8,32], index: 2, kind: input, shape index: {}]   ;;  %s1513_s3 = inlined_call_operand.vmem [shape: f32[1,8], index: 3, kind: input, shape index: {}]   ;;  %s1514_s4 = inlined_call_operand.hbm [shape: f32[1,2,8], index: 4, kind: output, shape index: {}]  }
   0x1   :  { %10 = vsyncpa [#allocation6], 0  ;;  %s30_s17 = sshll.u32 %s1511_s1, 4  ;;  %s31_s17 = int_to_ptr.hbm [resolvable:$true] %s30_s17 }
   0x2   :  { %11 = vsyncpa [#allocation4], 0  ;;  %s860_s18 = smov [#allocation5]   ;;  %s16_s22 = sshll.u32 %s1510_s0, 4  ;;  %s17_s22 = int_to_ptr.hbm [resolvable:$true] %s16_s22 }
   0x3   :  { %s32_s19 = sshll.u32 %s860_s18, 4  ;;  %s861_s23 = smov [#allocation2]   ;;  %s33_s19 = int_to_ptr.vmem [resolvable:$true] %s32_s19 }
   0x4   :  { %35 = dma.hbm_to_vmem [thread:$0]  %s31_s17, 64, %s33_s19, [#allocation6]  }
   0x5   :  { %s18_s24 = sshll.u32 %s861_s23, 4  ;;  %s862_s25 = smov 64   ;;  %s19_s24 = int_to_ptr.vmem [resolvable:$true] %s18_s24 }
   0x6   :  { %s863_s26 = smov 4   ;;  %s41_s28 = sshll.u32 %s1512_s2, 4  ;;  %s42_s28 = int_to_ptr.hbm [resolvable:$true] %s41_s28 }
   0x7   :  { %24 = dma.hbm_to_vmem [thread:$0]  %s17_s22, 1024, %s19_s24, [#allocation3], %s862_s25, %s862_s25, %s863_s26  }
   0x8   :  { %s864_s29 = smov [#allocation7]  }
   0x9   :  { %s43_s30 = sshll.u32 %s864_s29, 4  ;;  %s44_s30 = int_to_ptr.vmem [resolvable:$true] %s43_s30 }
   0xa   :  { %46 = dma.hbm_to_vmem [thread:$0]  %s42_s28, 128, %s44_s30, [#allocation6]  }
   0xb   :  { %854 = dma.done.wait [#allocation3], 1024  }
   0xc   :  { %855 = vsyncadd [#allocation3], 4294966272 }
   0xd   :  { %856 = dma.done.wait [#allocation6], 192  }
   0xe   :  { %857 = vsyncadd [#allocation6], 4294967104  ;;  %vm77_vm0 = vcmask 257024   ;;  %v71_v0 = vld [vmem:[#allocation2 + $0x28] sm:$0xf]  ;;  %v865_v32 = vmov 32.0  }
   0xf   :  { %v69_v1 = vld [vmem:[#allocation2 + $0x20] sm:$0xf]  ;;  %v910_v2 = vld [vmem:[#allocation2 + $0x4] sm:$0xf]  ;;  %v108_v3 = vsel %vm77_vm0, %v71_v0, 0.0  ;;  %724 = vrcp.f32 %v865_v32  ;;  %s868_s0 = smov 8  }
  0x10   :  { %v102_v4 = vsel %vm77_vm0, %v69_v1, 0.0  ;;  %v81_v5 = vsel %vm77_vm0, %v910_v2, 0.0  ;;  %109 = vadd.xlane.f32.xlu1 %v108_v3  ;;  %v916_v6 = vld [vmem:[#allocation2 + $0x24] sm:$0xf]  ;;  %v918_v7 = vld [vmem:[#allocation2] sm:$0xf] }
  0x11   :  { %103 = vadd.xlane.f32.xlu0 %v102_v4  ;;  %82 = vadd.xlane.f32.xlu2 %v81_v5  ;;  %v920_v8 = vld [vmem:[#allocation2 + $0x2c] sm:$0xf]  ;;  %v105_v9 = vsel %vm77_vm0, %v916_v6, 0.0  ;;  %v78_v10 = vsel %vm77_vm0, %v918_v7, 0.0  ;;  %v928_v12 = vld [vmem:[#allocation2 + $0x8] sm:$0xf] }
  0x12   :  { %v111_v11 = vsel %vm77_vm0, %v920_v8, 0.0  ;;  %v930_v13 = vld [vmem:[#allocation2 + $0x30] sm:$0xf]  ;;  %v932_v14 = vld [vmem:[#allocation2 + $0xc] sm:$0xf]  ;;  %v84_v15 = vsel %vm77_vm0, %v928_v12, 0.0 }
  0x13   :  { %v114_v16 = vsel %vm77_vm0, %v930_v13, 0.0  ;;  %v87_v17 = vsel %vm77_vm0, %v932_v14, 0.0  ;;  %v940_v18 = vld [vmem:[#allocation2 + $0x34] sm:$0xf]  ;;  %v942_v19 = vld [vmem:[#allocation2 + $0x10] sm:$0xf] }
  0x14   :  { %v944_v20 = vld [vmem:[#allocation2 + $0x38] sm:$0xf]  ;;  %v117_v21 = vsel %vm77_vm0, %v940_v18, 0.0  ;;  %v90_v22 = vsel %vm77_vm0, %v942_v19, 0.0  ;;  %v952_v24 = vld [vmem:[#allocation2 + $0x14] sm:$0xf] }
  0x15   :  { %v120_v23 = vsel %vm77_vm0, %v944_v20, 0.0  ;;  %v954_v25 = vld [vmem:[#allocation2 + $0x3c] sm:$0xf]  ;;  %v956_v26 = vld [vmem:[#allocation2 + $0x18] sm:$0xf]  ;;  %v93_v27 = vsel %vm77_vm0, %v952_v24, 0.0  ;;  %v725_v33 = vpop.eup %724 }
  0x16   :  { %v123_v28 = vsel %vm77_vm0, %v954_v25, 0.0  ;;  %v96_v29 = vsel %vm77_vm0, %v956_v26, 0.0  ;;  %v964_v30 = vld [vmem:[#allocation2 + $0x1c] sm:$0xf]  ;;  %v127_v34 = vmul.f32 32.0, %v725_v33  ;;  %vm131_vm1 = vweird.f32 %v725_v33  ;;  %s869_s2 = smov 12  }
  0x17   :  { %v99_v31 = vsel %vm77_vm0, %v964_v30, 0.0  ;;  %s870_s5 = smov 24   ;;  %s871_s6 = smov 16  }
  0x18   :  { %79 = vadd.xlane.f32.xlu1 %v78_v10  ;;  %v128_v35 = vsub.f32 1.0, %v127_v34  ;;  %s872_s7 = smov 20   ;;  %s873_s8 = smov 28  }
  0x19   :  { %106 = vadd.xlane.f32.xlu0 %v105_v9  ;;  %112 = vadd.xlane.f32.xlu2 %v111_v11  ;;  %s874_s11 = smov [#allocation8]   ;;  %s695_s15 = sshll.u32 %s1514_s4, 4  ;;  %s696_s15 = int_to_ptr.hbm [resolvable:$true] %s695_s15 }
  0x1a   :  { %v129_v36 = vmul.f32 %v725_v33, %v128_v35  ;;  %s693_s12 = sshll.u32 %s874_s11, 4  ;;  %s694_s12 = int_to_ptr.vmem [resolvable:$true] %s693_s12 }
  0x1c   :  { %v130_v37 = vadd.f32 %v725_v33, %v129_v36 }
  0x1e   :  { %v968_v38 = vsel %vm131_vm1, %v725_v33, %v130_v37 }
  0x20   :  { %115 = vadd.xlane.f32.xlu1 %v114_v16 }
  0x21   :  { %85 = vadd.xlane.f32.xlu0 %v84_v15  ;;  %88 = vadd.xlane.f32.xlu2 %v87_v17 }
  0x28   :  { %91 = vadd.xlane.f32.xlu1 %v90_v22 }
  0x29   :  { %118 = vadd.xlane.f32.xlu0 %v117_v21  ;;  %121 = vadd.xlane.f32.xlu2 %v120_v23 }
  0x30   :  { %124 = vadd.xlane.f32.xlu1 %v123_v28 }
  0x31   :  { %94 = vadd.xlane.f32.xlu0 %v93_v27  ;;  %97 = vadd.xlane.f32.xlu2 %v96_v29 }
  0x39   :  { %100 = vadd.xlane.f32.xlu0 %v99_v31 }
  0x83   :  { %v110_v39 = vpop.xlane.xlu1 %109 }
  0x84   :  { %v104_v40 = vpop.xlane.xlu0 %103  ;;  %v143_v41 = vmul.f32 %v968_v38, %v110_v39  ;;  %v83_v43 = vpop.xlane.xlu2 %82 }
  0x85   :  { %v141_v42 = vmul.f32 %v968_v38, %v104_v40  ;;  %v134_v56 = vmul.f32 %v968_v38, %v83_v43 }
  0x86   :  { %v972_v44 = vsub.f32 %v71_v0, %v143_v41 }
  0x87   :  { %v974_v45 = vsub.f32 %v69_v1, %v141_v42  ;;  %v1002_v63 = vsub.f32 %v910_v2, %v134_v56 }
  0x88   :  { %v175_v46 = vmul.f32 %v972_v44, %v972_v44 }
  0x89   :  { %v173_v47 = vmul.f32 %v974_v45, %v974_v45  ;;  %v166_v10 = vmul.f32 %v1002_v63, %v1002_v63 }
  0x8a   :  { %v211_v48 = vsel %vm77_vm0, %v175_v46, 0.0 }
  0x8b   :  { %v205_v49 = vsel %vm77_vm0, %v173_v47, 0.0  ;;  %212 = vadd.xlane.f32.xlu0 %v211_v48  ;;  %v80_v51 = vpop.xlane.xlu1 %79  ;;  %v184_v21 = vsel %vm77_vm0, %v166_v10, 0.0 }
  0x8c   :  { %v107_v50 = vpop.xlane.xlu0 %106  ;;  %206 = vadd.xlane.f32.xlu1 %v205_v49  ;;  %v113_v53 = vpop.xlane.xlu2 %112  ;;  %v133_v54 = vmul.f32 %v968_v38, %v80_v51 }
  0x8d   :  { %v142_v52 = vmul.f32 %v968_v38, %v107_v50  ;;  %v144_v55 = vmul.f32 %v968_v38, %v113_v53 }
  0x8e   :  { %v990_v58 = vsub.f32 %v918_v7, %v133_v54 }
  0x8f   :  { %v987_v57 = vsub.f32 %v916_v6, %v142_v52  ;;  %v993_v59 = vsub.f32 %v920_v8, %v144_v55 }
  0x90   :  { %v165_v61 = vmul.f32 %v990_v58, %v990_v58 }
  0x91   :  { %v174_v60 = vmul.f32 %v987_v57, %v987_v57  ;;  %v176_v62 = vmul.f32 %v993_v59, %v993_v59 }
  0x92   :  { %v181_v1 = vsel %vm77_vm0, %v165_v61, 0.0 }
  0x93   :  { %v208_v0 = vsel %vm77_vm0, %v174_v60, 0.0  ;;  %v214_v4 = vsel %vm77_vm0, %v176_v62, 0.0  ;;  %v116_v5 = vpop.xlane.xlu1 %115 }
  0x94   :  { %v86_v3 = vpop.xlane.xlu0 %85  ;;  %209 = vadd.xlane.f32.xlu2 %v208_v0  ;;  %182 = vadd.xlane.f32.xlu1 %v181_v1  ;;  %v89_v7 = vpop.xlane.xlu2 %88  ;;  %v145_v8 = vmul.f32 %v968_v38, %v116_v5 }
  0x95   :  { %v135_v6 = vmul.f32 %v968_v38, %v86_v3  ;;  %215 = vadd.xlane.f32.xlu0 %v214_v4  ;;  %v136_v9 = vmul.f32 %v968_v38, %v89_v7 }
  0x96   :  { %v1021_v16 = vsub.f32 %v930_v13, %v145_v8 }
  0x97   :  { %v1011_v2 = vsub.f32 %v928_v12, %v135_v6  ;;  %v1016_v11 = vsub.f32 %v932_v14, %v136_v9 }
  0x98   :  { %v177_v13 = vmul.f32 %v1021_v16, %v1021_v16 }
  0x99   :  { %v167_v15 = vmul.f32 %v1011_v2, %v1011_v2  ;;  %v168_v17 = vmul.f32 %v1016_v11, %v1016_v11 }
  0x9a   :  { %v217_v35 = vsel %vm77_vm0, %v177_v13, 0.0 }
  0x9b   :  { %v187_v12 = vsel %vm77_vm0, %v167_v15, 0.0  ;;  %v190_v23 = vsel %vm77_vm0, %v168_v17, 0.0  ;;  %v92_v14 = vpop.xlane.xlu1 %91 }
  0x9c   :  { %v119_v22 = vpop.xlane.xlu0 %118  ;;  %185 = vadd.xlane.f32.xlu2 %v184_v21  ;;  %188 = vadd.xlane.f32.xlu1 %v187_v12  ;;  %v122_v28 = vpop.xlane.xlu2 %121  ;;  %v137_v29 = vmul.f32 %v968_v38, %v92_v14 }
  0x9d   :  { %v146_v27 = vmul.f32 %v968_v38, %v119_v22  ;;  %191 = vadd.xlane.f32.xlu0 %v190_v23  ;;  %v147_v31 = vmul.f32 %v968_v38, %v122_v28 }
  0x9e   :  { %v153_v36 = vsub.f32 %v942_v19, %v137_v29 }
  0x9f   :  { %v1034_v32 = vsub.f32 %v940_v18, %v146_v27  ;;  %v1037_v33 = vsub.f32 %v944_v20, %v147_v31 }
  0xa0   :  { %v169_v43 = vmul.f32 %v153_v36, %v153_v36 }
  0xa1   :  { %v178_v34 = vmul.f32 %v1034_v32, %v1034_v32  ;;  %v179_v37 = vmul.f32 %v1037_v33, %v1037_v33 }
  0xa2   :  { %v193_v50 = vsel %vm77_vm0, %v169_v43, 0.0 }
  0xa3   :  { %v220_v39 = vsel %vm77_vm0, %v178_v34, 0.0  ;;  %v223_v41 = vsel %vm77_vm0, %v179_v37, 0.0  ;;  %v125_v18 = vpop.xlane.xlu1 %124 }
  0xa4   :  { %v95_v40 = vpop.xlane.xlu0 %94  ;;  %221 = vadd.xlane.f32.xlu1 %v220_v39  ;;  %218 = vadd.xlane.f32.xlu2 %v217_v35  ;;  %v98_v42 = vpop.xlane.xlu2 %97  ;;  %v148_v46 = vmul.f32 %v968_v38, %v125_v18 }
  0xa5   :  { %v138_v20 = vmul.f32 %v968_v38, %v95_v40  ;;  %224 = vadd.xlane.f32.xlu0 %v223_v41  ;;  %v139_v19 = vmul.f32 %v968_v38, %v98_v42 }
  0xa6   :  { %v164_v51 = vsub.f32 %v954_v25, %v148_v46 }
  0xa7   :  { %v154_v47 = vsub.f32 %v952_v24, %v138_v20  ;;  %v155_v48 = vsub.f32 %v956_v26, %v139_v19  ;;  %v421_v26 = vld [vmem:[#allocation5] sm:$0xf] }
  0xa8   :  { %v180_v60 = vmul.f32 %v164_v51, %v164_v51  ;;  %v431_v61 = vmul.f32 %v421_v26, %v987_v57  ;;  %v432_v3 = vmul.f32 %v421_v26, %v972_v44  ;;  %v430_v4 = vmul.f32 %v421_v26, %v974_v45 }
  0xa9   :  { %v170_v49 = vmul.f32 %v154_v47, %v154_v47  ;;  %v171_v52 = vmul.f32 %v155_v48, %v155_v48  ;;  %v423_v5 = vmul.f32 %v421_v26, %v1002_v63  ;;  %v433_v7 = vmul.f32 %v421_v26, %v993_v59 }
  0xaa   :  { %v226_v25 = vsel %vm77_vm0, %v180_v60, 0.0  ;;  %v465_v1 = vsel %vm77_vm0, %v431_v61, 0.0  ;;  %v462_v57 = vsel %vm77_vm0, %v430_v4, 0.0  ;;  %v422_v8 = vmul.f32 %v421_v26, %v990_v58 }
  0xab   :  { %v196_v53 = vsel %vm77_vm0, %v170_v49, 0.0  ;;  %v199_v55 = vsel %vm77_vm0, %v171_v52, 0.0  ;;  %v441_v6 = vsel %vm77_vm0, %v423_v5, 0.0  ;;  %v434_v9 = vmul.f32 %v421_v26, %v1021_v16 }
  0xac   :  { %v101_v54 = vpop.xlane.xlu0 %100  ;;  %197 = vadd.xlane.f32.xlu1 %v196_v53  ;;  %194 = vadd.xlane.f32.xlu2 %v193_v50  ;;  %v471_v44 = vsel %vm77_vm0, %v433_v7, 0.0  ;;  %v438_v45 = vsel %vm77_vm0, %v422_v8, 0.0  ;;  %v425_v10 = vmul.f32 %v421_v26, %v1016_v11  ;;  %v424_v15 = vmul.f32 %v421_v26, %v1011_v2 }
  0xad   :  { %v140_v56 = vmul.f32 %v968_v38, %v101_v54  ;;  %200 = vadd.xlane.f32.xlu0 %v199_v55  ;;  %v474_v63 = vsel %vm77_vm0, %v434_v9, 0.0  ;;  %v426_v17 = vmul.f32 %v421_v26, %v153_v36  ;;  %v436_v21 = vmul.f32 %v421_v26, %v1037_v33 }
  0xae   :  { %v447_v59 = vsel %vm77_vm0, %v425_v10, 0.0  ;;  %v444_v58 = vsel %vm77_vm0, %v424_v15, 0.0  ;;  %v435_v12 = vmul.f32 %v421_v26, %v1034_v32  ;;  %v437_v22 = vmul.f32 %v421_v26, %v164_v51 }
  0xaf   :  { %v156_v24 = vsub.f32 %v964_v30, %v140_v56  ;;  %v468_v30 = vsel %vm77_vm0, %v432_v3, 0.0  ;;  %v450_v16 = vsel %vm77_vm0, %v426_v17, 0.0  ;;  %v480_v23 = vsel %vm77_vm0, %v436_v21, 0.0 }
  0xb0   :  { %v477_v11 = vsel %vm77_vm0, %v435_v12, 0.0  ;;  %v483_v2 = vsel %vm77_vm0, %v437_v22, 0.0  ;;  %v428_v14 = vmul.f32 %v421_v26, %v155_v48  ;;  %v427_v27 = vmul.f32 %v421_v26, %v154_v47 }
  0xb1   :  { %v172_v62 = vmul.f32 %v156_v24, %v156_v24  ;;  %v429_v29 = vmul.f32 %v421_v26, %v156_v24 }
  0xb2   :  { %v456_v28 = vsel %vm77_vm0, %v428_v14, 0.0  ;;  %v453_v13 = vsel %vm77_vm0, %v427_v27, 0.0 }
  0xb3   :  { %v202_v0 = vsel %vm77_vm0, %v172_v62, 0.0  ;;  %v459_v31 = vsel %vm77_vm0, %v429_v29, 0.0  ;;  %v518_v29 = vlaneseq }
  0xb4   :  { %203 = vadd.xlane.f32.xlu1 %v202_v0  ;;  %227 = vadd.xlane.f32.xlu2 %v226_v25 }
  0xb5   :  { %466 = vadd.xlane.f32.xlu0 %v465_v1 }
  0xbc   :  { %469 = vadd.xlane.f32.xlu1 %v468_v30  ;;  %463 = vadd.xlane.f32.xlu2 %v462_v57 }
  0xbd   :  { %442 = vadd.xlane.f32.xlu0 %v441_v6 }
  0xc4   :  { %472 = vadd.xlane.f32.xlu1 %v471_v44  ;;  %439 = vadd.xlane.f32.xlu2 %v438_v45 }
  0xc5   :  { %475 = vadd.xlane.f32.xlu0 %v474_v63 }
  0xcc   :  { %448 = vadd.xlane.f32.xlu1 %v447_v59  ;;  %445 = vadd.xlane.f32.xlu2 %v444_v58 }
  0xcd   :  { %451 = vadd.xlane.f32.xlu0 %v450_v16 }
  0xd4   :  { %481 = vadd.xlane.f32.xlu1 %v480_v23  ;;  %478 = vadd.xlane.f32.xlu2 %v477_v11 }
  0xd5   :  { %484 = vadd.xlane.f32.xlu0 %v483_v2 }
  0xdc   :  { %457 = vadd.xlane.f32.xlu1 %v456_v28  ;;  %454 = vadd.xlane.f32.xlu2 %v453_v13 }
  0xe4   :  { %460 = vadd.xlane.f32.xlu2 %v459_v31 }
  0xfe   :  { %v213_v32 = vpop.xlane.xlu0 %212 }
  0xff   :  { %v207_v33 = vpop.xlane.xlu1 %206  ;;  %v239_v37 = vmul.f32 %v213_v32, %v968_v38 }
 0x100   :  { %v237_v39 = vmul.f32 %v207_v33, %v968_v38 }
 0x101   :  { %v1089_v18 = vadd.f32 1e-05, %v239_v37 }
 0x102   :  { %v1091_v42 = vadd.f32 1e-05, %v237_v39 }
 0x103   :  { %726 = vrsqrt.f32 %v1089_v18  ;;  %vm367_vm3 = vweird.f32 %v1089_v18 }
 0x104   :  { %728 = vrsqrt.f32 %v1091_v42  ;;  %vm347_vm2 = vweird.f32 %v1091_v42 }
 0x107   :  { %v210_v34 = vpop.xlane.xlu2 %209  ;;  %v183_v35 = vpop.xlane.xlu1 %182 }
 0x108   :  { %v216_v36 = vpop.xlane.xlu0 %215  ;;  %v238_v43 = vmul.f32 %v210_v34, %v968_v38  ;;  %v229_v46 = vmul.f32 %v183_v35, %v968_v38 }
 0x109   :  { %v240_v19 = vmul.f32 %v216_v36, %v968_v38  ;;  %v1104_v54 = vpop.eup %726 }
 0x10a   :  { %v1098_v47 = vadd.f32 1e-05, %v238_v43  ;;  %v1101_v52 = vadd.f32 1e-05, %v229_v46  ;;  %v1109_v60 = vpop.eup %728  ;;  %v362_v26 = vmul.f32 %v1104_v54, %v1089_v18  ;;  %vm368_vm4 = vweird.f32 %v1104_v54 }
 0x10b   :  { %v1106_v55 = vadd.f32 1e-05, %v240_v19  ;;  %v342_v62 = vmul.f32 %v1109_v60, %v1091_v42  ;;  %v1185_v19 = vand.u32 127, %v518_v29  ;;  %vm348_vm6 = vweird.f32 %v1109_v60  ;;  %vm1241_vm12 = vmor %vm367_vm3, %vm368_vm4 }
 0x10c   :  { %730 = vrsqrt.f32 %v1098_v47  ;;  %v363_v6 = vmul.f32 %v1104_v54, %v362_v26  ;;  %vm357_vm5 = vweird.f32 %v1098_v47  ;;  %vm267_vm7 = vweird.f32 %v1101_v52  ;;  %vm1221_vm9 = vmor %vm347_vm2, %vm348_vm6 }
 0x10d   :  { %732 = vrsqrt.f32 %v1101_v52  ;;  %v343_v7 = vmul.f32 %v1109_v60, %v342_v62  ;;  %vm377_vm10 = vweird.f32 %v1106_v55  ;;  %vm536_vm3 = vcmask 1041409  }
 0x10e   :  { %734 = vrsqrt.f32 %v1106_v55  ;;  %v364_v17 = vmul.f32 0.5, %v363_v6 }
 0x10f   :  { %v186_v40 = vpop.xlane.xlu2 %185  ;;  %v189_v41 = vpop.xlane.xlu1 %188  ;;  %v344_v59 = vmul.f32 0.5, %v343_v7 }
 0x110   :  { %v192_v20 = vpop.xlane.xlu0 %191  ;;  %v230_v50 = vmul.f32 %v186_v40, %v968_v38  ;;  %v231_v56 = vmul.f32 %v189_v41, %v968_v38  ;;  %v365_v33 = vsub.f32 1.5, %v364_v17 }
 0x111   :  { %v232_v53 = vmul.f32 %v192_v20, %v968_v38  ;;  %v345_v32 = vsub.f32 1.5, %v344_v59 }
 0x112   :  { %v1112_v24 = vadd.f32 1e-05, %v230_v50  ;;  %v1122_v25 = vadd.f32 1e-05, %v231_v56  ;;  %v1127_v30 = vpop.eup %730 }
 0x113   :  { %v1117_v61 = vadd.f32 1e-05, %v232_v53  ;;  %v1136_v9 = vpop.eup %732  ;;  %v352_v45 = vmul.f32 %v1127_v30, %v1098_v47  ;;  %v1192_v50 = vmul.f32 %v1109_v60, %v345_v32  ;;  %vm358_vm8 = vweird.f32 %v1127_v30 }
 0x114   :  { %736 = vrsqrt.f32 %v1112_v24  ;;  %v1138_v44 = vpop.eup %734  ;;  %v262_v58 = vmul.f32 %v1136_v9, %v1101_v52  ;;  %vm277_vm11 = vweird.f32 %v1112_v24  ;;  %vm268_vm13 = vweird.f32 %v1136_v9  ;;  %vm1269_vm1 = vmor %vm357_vm5, %vm358_vm8 }
 0x115   :  { %738 = vrsqrt.f32 %v1117_v61  ;;  %v372_v21 = vmul.f32 %v1138_v44, %v1106_v55  ;;  %v353_v11 = vmul.f32 %v1127_v30, %v352_v45  ;;  %v350_v42 = vsel %vm1221_vm9, %v1109_v60, %v1192_v50  ;;  %vm1312_vm9 = vmor %vm267_vm7, %vm268_vm13 }
 0x116   :  { %740 = vrsqrt.f32 %v1122_v25  ;;  %v263_v31 = vmul.f32 %v1136_v9, %v262_v58  ;;  %vm378_vm14 = vweird.f32 %v1138_v44  ;;  %vm287_vm15 = vweird.f32 %v1122_v25 }
 0x117   :  { %v219_v48 = vpop.xlane.xlu2 %218  ;;  %v222_v49 = vpop.xlane.xlu1 %221  ;;  %v373_v39 = vmul.f32 %v1138_v44, %v372_v21  ;;  %v354_v40 = vmul.f32 0.5, %v353_v11  ;;  %vm297_vm0 = vweird.f32 %v1117_v61  ;;  %vm1297_vm5 = vmor %vm377_vm10, %vm378_vm14  ;;  %vm538_vm7 = vcmask 1042434  }
 0x118   :  { %v225_v51 = vpop.xlane.xlu0 %224  ;;  %v241_v0 = vmul.f32 %v219_v48, %v968_v38  ;;  %v242_v57 = vmul.f32 %v222_v49, %v968_v38  ;;  %v264_v49 = vmul.f32 0.5, %v263_v31  ;;  %vm540_vm14 = vcmask 1043459  }
 0x119   :  { %v243_v4 = vmul.f32 %v225_v51, %v968_v38  ;;  %v1196_v51 = vmul.f32 %v1104_v54, %v365_v33 }
 0x11a   :  { %v1134_v8 = vadd.f32 1e-05, %v241_v0  ;;  %v1144_v10 = vadd.f32 1e-05, %v242_v57  ;;  %v1146_v15 = vpop.eup %736 }
 0x11b   :  { %v1142_v63 = vadd.f32 1e-05, %v243_v4  ;;  %v1151_v16 = vpop.eup %738  ;;  %v272_v28 = vmul.f32 %v1146_v15, %v1112_v24  ;;  %v370_v60 = vsel %vm1241_vm12, %v1104_v54, %v1196_v51  ;;  %vm278_vm2 = vweird.f32 %v1146_v15 }
 0x11c   :  { %742 = vrsqrt.f32 %v1134_v8  ;;  %v1155_v23 = vpop.eup %740  ;;  %v292_v34 = vmul.f32 %v1151_v16, %v1117_v61  ;;  %vm387_vm4 = vweird.f32 %v1134_v8  ;;  %vm298_vm8 = vweird.f32 %v1151_v16  ;;  %vm1320_vm10 = vmor %vm277_vm11, %vm278_vm2 }
 0x11d   :  { %744 = vrsqrt.f32 %v1142_v63  ;;  %v282_v35 = vmul.f32 %v1155_v23, %v1122_v25  ;;  %v273_v43 = vmul.f32 %v1146_v15, %v272_v28  ;;  %vm288_vm6 = vweird.f32 %v1155_v23  ;;  %vm1344_vm12 = vmor %vm297_vm0, %vm298_vm8 }
 0x11e   :  { %746 = vrsqrt.f32 %v1144_v10  ;;  %v293_v56 = vmul.f32 %v1151_v16, %v292_v34  ;;  %vm397_vm13 = vweird.f32 %v1144_v10  ;;  %vm1362_vm0 = vmor %vm287_vm15, %vm288_vm6  ;;  %vm407_vm15 = vweird.f32 %v1142_v63 }
 0x11f   :  { %v195_v1 = vpop.xlane.xlu2 %194  ;;  %v198_v3 = vpop.xlane.xlu1 %197  ;;  %v283_v26 = vmul.f32 %v1155_v23, %v282_v35  ;;  %v274_v6 = vmul.f32 0.5, %v273_v43  ;;  %vm542_vm2 = vcmask 1044484  }
 0x120   :  { %v201_v5 = vpop.xlane.xlu0 %200  ;;  %v233_v2 = vmul.f32 %v195_v1, %v968_v38  ;;  %v234_v13 = vmul.f32 %v198_v3, %v968_v38  ;;  %v374_v3 = vmul.f32 0.5, %v373_v39  ;;  %v294_v58 = vmul.f32 0.5, %v293_v56 }
 0x121   :  { %v235_v41 = vmul.f32 %v201_v5, %v968_v38  ;;  %v355_v5 = vsub.f32 1.5, %v354_v40  ;;  %v284_v21 = vmul.f32 0.5, %v283_v26  ;;  %v275_v28 = vsub.f32 1.5, %v274_v6 }
 0x122   :  { %v1176_v37 = vpop.eup %742  ;;  %v1180_v20 = vadd.f32 1e-05, %v233_v2  ;;  %v1183_v46 = vadd.f32 1e-05, %v234_v13  ;;  %v375_v2 = vsub.f32 1.5, %v374_v3 }
 0x123   :  { %v1188_v48 = vpop.eup %744  ;;  %v382_v62 = vmul.f32 %v1176_v37, %v1134_v8  ;;  %v1210_v4 = vadd.f32 1e-05, %v235_v41  ;;  %v285_v40 = vsub.f32 1.5, %v284_v21  ;;  %v295_v41 = vsub.f32 1.5, %v294_v58 }
 0x124   :  { %v1198_v53 = vpop.eup %746  ;;  %v402_v45 = vmul.f32 %v1188_v48, %v1142_v63  ;;  %v376_v50 = vmul.f32 %v1138_v44, %v375_v2  ;;  %v1290_v56 = vmul.f32 %v1146_v15, %v275_v28  ;;  %vm388_vm11 = vweird.f32 %v1176_v37 }
 0x125   :  { %v392_v17 = vmul.f32 %v1198_v53, %v1144_v10  ;;  %v1329_v52 = vmul.f32 %v1155_v23, %v285_v40  ;;  %vm389_vm6 = vmor %vm387_vm4, %vm388_vm11  ;;  %vm307_vm4 = vweird.f32 %v1180_v20 }
 0x126   :  { %v403_v13 = vmul.f32 %v1188_v48, %v402_v45  ;;  %v380_v58 = vsel %vm1297_vm5, %v1138_v44, %v376_v50  ;;  %vm398_vm5 = vweird.f32 %v1198_v53 }
 0x127   :  { %v228_v12 = vpop.xlane.xlu2 %227  ;;  %v204_v22 = vpop.xlane.xlu1 %203  ;;  %v393_v29 = vmul.f32 %v1198_v53, %v392_v17  ;;  %v1332_v17 = vmul.f32 %v1151_v16, %v295_v41 }
 0x128   :  { %v1160_v14 = vpop.xlane.xlu0 %466  ;;  %v244_v27 = vmul.f32 %v228_v12, %v968_v38  ;;  %v236_v59 = vmul.f32 %v204_v22, %v968_v38  ;;  %v383_v12 = vmul.f32 %v1176_v37, %v382_v62  ;;  %v265_v38 = vsub.f32 1.5, %v264_v49 }
 0x129   :  { %v356_v22 = vmul.f32 %v1127_v30, %v355_v5  ;;  %v404_v62 = vmul.f32 0.5, %v403_v13  ;;  %v394_v3 = vmul.f32 0.5, %v393_v29  ;;  %v300_v25 = vsel %vm1344_vm12, %v1151_v16, %v1332_v17 }
 0x12a   :  { %v1173_v36 = vadd.f32 1e-05, %v244_v27  ;;  %v1260_v31 = vadd.f32 1e-05, %v236_v59  ;;  %v384_v32 = vmul.f32 0.5, %v383_v12  ;;  %v1276_v35 = vmul.f32 %v1136_v9, %v265_v38 }
 0x12b   :  { %v360_v43 = vsel %vm1269_vm1, %v1127_v30, %v356_v22  ;;  %v395_v38 = vsub.f32 1.5, %v394_v3  ;;  %v405_v22 = vsub.f32 1.5, %v404_v62  ;;  %vm408_vm1 = vweird.f32 %v1188_v48 }
 0x12c   :  { %748 = vrsqrt.f32 %v1173_v36  ;;  %v385_v7 = vsub.f32 1.5, %v384_v32  ;;  %v270_v45 = vsel %vm1312_vm9, %v1136_v9, %v1276_v35  ;;  %v495_v61 = vmul.f32 %v1160_v14, %v360_v43 }
 0x12d   :  { %750 = vrsqrt.f32 %v1180_v20  ;;  %v290_v14 = vsel %vm1362_vm0, %v1155_v23, %v1329_v52  ;;  %v396_v43 = vmul.f32 %v1198_v53, %v395_v38  ;;  %vm417_vm11 = vweird.f32 %v1173_v36  ;;  %vm399_vm0 = vmor %vm397_vm13, %vm398_vm5 }
 0x12e   :  { %752 = vrsqrt.f32 %v1183_v46  ;;  %v529_v41 = vperm.slane %v495_v61, %v1185_v19  ;;  %vm544_vm12 = vcmask 1045509   ;;  %vm327_vm5 = vweird.f32 %v1210_v4 }
 0x12f   :  { %v1205_v0 = vpop.xlane.xlu2 %463  ;;  %v1207_v1 = vpop.xlane.xlu1 %469  ;;  %754 = vrsqrt.f32 %v1210_v4  ;;  %v400_v6 = vsel %vm399_vm0, %v1198_v53, %v396_v43 }
 0x130   :  { %v1213_v57 = vpop.xlane.xlu0 %442  ;;  %756 = vrsqrt.f32 %v1260_v31  ;;  %v494_v24 = vmul.f32 %v1205_v0, %v350_v42  ;;  %v280_v42 = vsel %vm1320_vm10, %v1146_v15, %v1290_v56  ;;  %v496_v2 = vmul.f32 %v1207_v1, %v370_v60  ;;  %vm1401_vm10 = vmor %vm407_vm15, %vm408_vm1 }
 0x131   :  { %v386_v15 = vmul.f32 %v1176_v37, %v385_v7  ;;  %v487_v63 = vmul.f32 %v1213_v57, %v280_v42  ;;  %vm317_vm15 = vweird.f32 %v1183_v46 }
 0x132   :  { %v1251_v27 = vpop.eup %748  ;;  %v528_v33 = vperm.slane %v494_v24, %v1185_v19 }
 0x133   :  { %v1256_v18 = vpop.eup %750  ;;  %v412_v49 = vmul.f32 %v1251_v27, %v1173_v36  ;;  %vm418_vm13 = vweird.f32 %v1251_v27 }
 0x134   :  { %v1263_v54 = vpop.eup %752  ;;  %v302_v51 = vmul.f32 %v1256_v18, %v1180_v20  ;;  %vm308_vm8 = vweird.f32 %v1256_v18  ;;  %v550_v56 = vsel %vm536_vm3, %v529_v41, %v528_v33  ;;  %vm419_vm1 = vmor %vm417_vm11, %vm418_vm13  ;;  %vm546_vm11 = vcmask 1046534  }
 0x135   :  { %v1303_v26 = vpop.eup %754  ;;  %v312_v5 = vmul.f32 %v1263_v54, %v1183_v46  ;;  %v413_v59 = vmul.f32 %v1251_v27, %v412_v49  ;;  %v406_v49 = vmul.f32 %v1188_v48, %v405_v22  ;;  %vm318_vm9 = vweird.f32 %v1263_v54 }
 0x136   :  { %v322_v12 = vmul.f32 %v1303_v26, %v1210_v4  ;;  %v303_v0 = vmul.f32 %v1256_v18, %v302_v51  ;;  %v1376_v29 = vpop.eup %756  ;;  %v390_v51 = vsel %vm389_vm6, %v1176_v37, %v386_v15  ;;  %vm328_vm6 = vweird.f32 %v1303_v26  ;;  %vm319_vm0 = vmor %vm317_vm15, %vm318_vm9 }
 0x137   :  { %v1273_v34 = vpop.xlane.xlu2 %439  ;;  %v473_v39 = vpop.xlane.xlu1 %472  ;;  %v313_v44 = vmul.f32 %v1263_v54, %v312_v5  ;;  %v414_v32 = vmul.f32 0.5, %v413_v59  ;;  %v332_v50 = vmul.f32 %v1376_v29, %v1260_v31  ;;  %vm337_vm13 = vweird.f32 %v1260_v31 }
 0x138   :  { %v1284_v47 = vpop.xlane.xlu0 %475  ;;  %v323_v60 = vmul.f32 %v1303_v26, %v322_v12  ;;  %v304_v23 = vmul.f32 0.5, %v303_v0  ;;  %v497_v40 = vmul.f32 %v473_v39, %v380_v58  ;;  %v530_v39 = vperm.slane %v496_v2, %v1185_v19 }
 0x139   :  { %v314_v16 = vmul.f32 0.5, %v313_v44  ;;  %v498_v30 = vmul.f32 %v1284_v47, %v390_v51  ;;  %v415_v62 = vsub.f32 1.5, %v414_v32  ;;  %v410_v47 = vsel %vm1401_vm10, %v1188_v48, %v406_v49  ;;  %vm1450_vm10 = vmor %vm307_vm4, %vm308_vm8 }
 0x13a   :  { %v324_v37 = vmul.f32 0.5, %v323_v60  ;;  %v531_v3 = vperm.slane %v497_v40, %v1185_v19  ;;  %v305_v5 = vsub.f32 1.5, %v304_v23  ;;  %v333_v52 = vmul.f32 %v1376_v29, %v332_v50  ;;  %vm329_vm4 = vmor %vm327_vm5, %vm328_vm6 }
 0x13b   :  { %v315_v7 = vsub.f32 1.5, %v314_v16  ;;  %v551_v17 = vsel %vm538_vm7, %v530_v39, %v550_v56  ;;  %v486_v10 = vmul.f32 %v1273_v34, %v270_v45  ;;  %v532_v59 = vperm.slane %v498_v30, %v1185_v19 }
 0x13c   :  { %v416_v48 = vmul.f32 %v1251_v27, %v415_v62  ;;  %v552_v21 = vsel %vm540_vm14, %v531_v3, %v551_v17  ;;  %v306_v12 = vmul.f32 %v1256_v18, %v305_v5  ;;  %v325_v45 = vsub.f32 1.5, %v324_v37 }
 0x13d   :  { %v316_v35 = vmul.f32 %v1263_v54, %v315_v7  ;;  %v334_v0 = vmul.f32 0.5, %v333_v52  ;;  %v520_v42 = vperm.slane %v486_v10, %v1185_v19  ;;  %v553_v11 = vsel %vm542_vm2, %v532_v59, %v552_v21 }
 0x13e   :  { %v420_v61 = vsel %vm419_vm1, %v1251_v27, %v416_v48  ;;  %v521_v27 = vperm.slane %v487_v63, %v1185_v19  ;;  %v310_v20 = vsel %vm1450_vm10, %v1256_v18, %v306_v12  ;;  %vm548_vm8 = vcmask 1047559  }
 0x13f   :  { %v446_v28 = vpop.xlane.xlu2 %445  ;;  %v449_v13 = vpop.xlane.xlu1 %448  ;;  %v866_v16 = vmov 1983009808   ;;  %vm560_vm15 = vcmask 1047556   ;;  %v867_v5 = vmov 1934713408   ;;  %vm644_vm9 = vcmask 97280  }
 0x140   :  { %v1379_v1 = vpop.xlane.xlu0 %451  ;;  %v488_v55 = vmul.f32 %v446_v28, %v290_v14  ;;  %v489_v44 = vmul.f32 %v449_v13, %v300_v25  ;;  %v326_v28 = vmul.f32 %v1303_v26, %v325_v45  ;;  %v320_v25 = vsel %vm319_vm0, %v1263_v54, %v316_v35 }
 0x141   :  { %v335_v13 = vsub.f32 1.5, %v334_v0  ;;  %v537_v32 = vsel %vm536_vm3, %v521_v27, %v520_v42  ;;  %v490_v18 = vmul.f32 %v1379_v1, %v310_v20  ;;  %v563_v41 = vunpack.c.l.s4 %v866_v16  ;;  %v654_v27 = vld [vmem:[#allocation7] sm:$0xff] }
 0x142   :  { %v522_v36 = vperm.slane %v488_v55, %v1185_v19  ;;  %v523_v46 = vperm.slane %v489_v44, %v1185_v19  ;;  %v330_v4 = vsel %vm329_vm4, %v1303_v26, %v326_v28  ;;  %vm338_vm3 = vweird.f32 %v1376_v29 }
 0x143   :  { %v336_v50 = vmul.f32 %v1376_v29, %v335_v13  ;;  %v524_v51 = vperm.slane %v490_v18, %v1185_v19  ;;  %v564_v8 = vunpack.c.0.s8 %v563_v41  ;;  %v585_v63 = vunpack.c.l.s4 %v867_v5  ;;  %v723_v41 = vld [vmem:[%s1513_s3] ss:$0 sm:$0xff] }
 0x144   :  { %v539_v40 = vsel %vm538_vm7, %v522_v36, %v537_v32  ;;  %vm339_vm7 = vmor %vm337_vm13, %vm338_vm3  ;;  %vm646_vm1 = vcmask 130048   ;;  %vm648_vm5 = vcmask 162816   ;;  %vm650_vm6 = vcmask 195584  }
 0x145   :  { %v541_v39 = vsel %vm540_vm14, %v523_v46, %v539_v40  ;;  %v340_v62 = vsel %vm339_vm7, %v1376_v29, %v336_v50  ;;  %v586_v10 = vunpack.c.0.s8 %v585_v63  ;;  %vm659_vm14 = vcmask 261120  }
 0x146   :  { %v543_v26 = vsel %vm542_vm2, %v524_v51, %v541_v39  ;;  %706 = vmatpush.xpose.msk.msra.mxu0 %vm659_vm14, %v654_v27  ;;  %vm640_vm2 = vcmask 31744   ;;  %vm652_vm10 = vcmask 228352  }
 0x147   :  { %v479_v57 = vpop.xlane.xlu2 %478  ;;  %v482_v53 = vpop.xlane.xlu1 %481 }
 0x148   :  { %v499_v24 = vmul.f32 %v479_v57, %v400_v6  ;;  %v500_v58 = vmul.f32 %v482_v53, %v410_v47  ;;  %v485_v9 = vpop.xlane.xlu0 %484 }
 0x149   :  { %v501_v2 = vmul.f32 %v485_v9, %v420_v61 }
 0x14a   :  { %v533_v34 = vperm.slane %v499_v24, %v1185_v19  ;;  %v534_v38 = vperm.slane %v500_v58, %v1185_v19 }
 0x14b   :  { %v535_v54 = vperm.slane %v501_v2, %v1185_v19 }
 0x14c   :  { %v554_v15 = vsel %vm544_vm12, %v533_v34, %v553_v11 }
 0x14d   :  { %v555_v33 = vsel %vm546_vm11, %v534_v38, %v554_v15 }
 0x14e   :  { %v556_v43 = vsel %vm548_vm8, %v535_v54, %v555_v33 }
 0x14f   :  { %v455_v14 = vpop.xlane.xlu2 %454  ;;  %v458_v23 = vpop.xlane.xlu1 %457  ;;  %v570_v56 = vrot.slane %v556_v43, 4  ;;  %v575_v6 = vperm.slane %v556_v43, %v564_v8 }
 0x150   :  { %v491_v60 = vmul.f32 %v455_v14, %v320_v25  ;;  %v492_v49 = vmul.f32 %v458_v23, %v330_v4 }
 0x151   :  { %v571_v7 = vsel %vm560_vm15, 0.0, %v570_v56  ;;  %v580_v59 = vrot.slane %v575_v6, 4 }
 0x152   :  { %v525_v1 = vperm.slane %v491_v60, %v1185_v19  ;;  %v526_v31 = vperm.slane %v492_v49, %v1185_v19  ;;  %v579_v48 = vperm.slane %v571_v7, %v564_v8 }
 0x154   :  { %v545_v37 = vsel %vm544_vm12, %v525_v1, %v543_v26  ;;  %v592_v55 = vrot.slane %v579_v48, 4  ;;  %vm642_vm12 = vcmask 64512  }
 0x155   :  { %v547_v52 = vsel %vm546_vm11, %v526_v31, %v545_v37  ;;  %vm686_vm11 = vcmask 58368  }
 0x157   :  { %v461_v30 = vpop.xlane.xlu2 %460 }
 0x158   :  { %v493_v3 = vmul.f32 %v461_v30, %v340_v62 }
 0x15a   :  { %v527_v47 = vperm.slane %v493_v3, %v1185_v19 }
 0x15c   :  { %v549_v17 = vsel %vm548_vm8, %v527_v47, %v547_v52 }
 0x15d   :  { %v559_v57 = vrot.slane %v549_v17, 4  ;;  %v565_v53 = vperm.slane %v549_v17, %v564_v8 }
 0x15f   :  { %v561_v29 = vsel %vm560_vm15, 0.0, %v559_v57  ;;  %v582_v24 = vrot.slane %v565_v53, 4  ;;  %v581_v58 = vsel %vm560_vm15, %v580_v59, %v565_v53 }
 0x160   :  { %v569_v21 = vperm.slane %v561_v29, %v564_v8  ;;  %v587_v12 = vperm.slane %v581_v58, %v586_v10 }
 0x161   :  { %v583_v19 = vsel %vm560_vm15, %v575_v6, %v582_v24 }
 0x162   :  { %v591_v9 = vperm.slane %v583_v19, %v586_v10  ;;  %v604_v34 = vrot.slane %v587_v12, 4  ;;  %v594_v35 = vrot.slane %v569_v21, 4  ;;  %v593_v45 = vsel %vm560_vm15, %v592_v55, %v569_v21 }
 0x163   :  { %v599_v61 = vperm.slane %v593_v45, %v586_v10 }
 0x164   :  { %617 = vrot.lane.b32.xlu1 %v591_v9, %s868_s0  ;;  %v605_v0 = vsel %vm560_vm15, 0.0, %v604_v34  ;;  %v606_v42 = vrot.slane %v591_v9, 4  ;;  %v595_v11 = vsel %vm560_vm15, %v579_v48, %v594_v35 }
 0x165   :  { %613 = vrot.lane.b32.xlu0 %v605_v0, %s863_s26  ;;  %v603_v38 = vperm.slane %v595_v11, %v586_v10  ;;  %v608_v22 = vrot.slane %v599_v61, 4 }
 0x166   :  { %v607_v44 = vsel %vm560_vm15, 0.0, %v606_v42 }
 0x167   :  { %621 = vrot.lane.b32.xlu2 %v607_v44, %s869_s2  ;;  %v609_v36 = vsel %vm560_vm15, 0.0, %v608_v22  ;;  %v610_v2 = vrot.slane %v603_v38, 4 }
 0x169   :  { %v611_v15 = vsel %vm560_vm15, 0.0, %v610_v2 }
 0x16c   :  { %633 = vrot.lane.b32.xlu1 %v603_v38, %s870_s5 }
 0x16d   :  { %625 = vrot.lane.b32.xlu0 %v599_v61, %s871_s6 }
 0x16f   :  { %629 = vrot.lane.b32.xlu2 %v609_v36, %s872_s7 }
 0x175   :  { %637 = vrot.lane.b32.xlu0 %v611_v15, %s873_s8 }
 0x1c1   :  { %v622_v20 = vpop.permute.xlu2 %621 }
 0x1c9   :  { %v630_v60 = vpop.permute.xlu2 %629 }
 0x1d6   :  { %v618_v25 = vpop.permute.xlu1 %617 }
 0x1d7   :  { %v614_v28 = vpop.permute.xlu0 %613 }
 0x1d8   :  { %v641_v14 = vsel %vm640_vm2, %v587_v12, %v614_v28 }
 0x1d9   :  { %v643_v13 = vsel %vm642_vm12, %v641_v14, %v618_v25 }
 0x1da   :  { %v645_v46 = vsel %vm644_vm9, %v643_v13, %v622_v20 }
 0x1de   :  { %v634_v18 = vpop.permute.xlu1 %633 }
 0x1df   :  { %v626_v32 = vpop.permute.xlu0 %625 }
 0x1e0   :  { %v647_v33 = vsel %vm646_vm1, %v645_v46, %v626_v32 }
 0x1e1   :  { %v649_v23 = vsel %vm648_vm5, %v647_v33, %v630_v60 }
 0x1e2   :  { %v651_v54 = vsel %vm650_vm6, %v649_v23, %v634_v18 }
 0x1e7   :  { %v638_v40 = vpop.permute.xlu0 %637 }
 0x1e8   :  { %v653_v16 = vsel %vm652_vm10, %v651_v54, %v638_v40 }
 0x1e9   :  { %707 = vmatmul.msk.f32.vlgmr.msra.gmra.mxu0 %vm659_vm14, %v653_v16 }
 0x266   :  { %v683_v4 = vpop.f32.mrf.mxu0 }
 0x267   :  { %v684_v43 = vadd.f32 %v723_v41, %v683_v4 }
 0x269   :  { %687 = vst.msk [vmem:[#allocation8] sm:$0x3] %vm686_vm11, %v684_v43 }
 0x26a   :  { %698 = dma.vmem_to_hbm [thread:$0]  %s694_s12, 32, %s696_s15, [#allocation4]  }
 0x26b   :  { %858 = dma.done.wait [#allocation4], 32  }
 0x26c   :  { %859 = vsyncadd [#allocation4], 4294967264 }
 0x26d   :  { %703 = vsyncpa [#allocation3], 1 }
 0x26e   :  { %704 = vsyncpa [#allocation6], 1 }
 0x26f   :  { %705 = vsyncpa [#allocation4], 1 }

</bundles_post_ra>
